<compile_context>
chip_gen: v7x
topology: tpu7x:2x2x1
jax: 0.10.0
libtpu: 0.0.40
codegen_flags: <defaults>
</compile_context>

<pallas_src>
import functools

import jax
import jax.numpy as jnp
from jax.experimental import pallas as pl
from jax.experimental.pallas import tpu as pltpu


def _leaky_relu(x, slope=0.1):           # module uses nn.LeakyReLU(0.1)
    return jnp.where(x >= 0, x, slope * x)


def _round_up(x, m):
    return ((x + m - 1) // m) * m


# ------------------------------ Pallas kernel -------------------------------

def _feat_mlp_max_kernel(pij_ref, hj_ref, hc_ref,
                         w1p_ref, w1hj_ref, w1hi_ref, b1_ref,
                         w2_ref, b2_ref, w3_ref, b3_ref,
                         out_ref, acc_ref):
    """One (row-tile, K-chunk) grid step of max_k MLP([p_ij | h_i | h_j]).

      pij_ref: (KC, TM, 3)  bf16   local neighbor offsets, K-major
      hj_ref:  (KC, TM, H)  bf16   gathered neighbor features, K-major
      hc_ref:  (TM, H)      bf16   center features (identical for every k)
      out_ref: (TM, H)      f32    max over all K of the 3-layer MLP
      acc_ref: (TM, H)      f32    running max across K chunks (VMEM scratch)
    """
    kc_idx = pl.program_id(1)
    n_kc = pl.num_programs(1)
    KC, TM, _ = hj_ref.shape
    H = out_ref.shape[-1]

    @pl.when(kc_idx == 0)
    def _():
        acc_ref[...] = jnp.full(acc_ref.shape, -jnp.inf, acc_ref.dtype)

    hj = hj_ref[...].reshape(KC * TM, H)
    pij = pij_ref[...].reshape(KC * TM, 3)

    # Layer 1, split three ways: neighbor-feature part + tiny p part (per
    # (i, j) pair), plus the center part which is identical across K and is
    # computed once per row tile from hc (h_i never streamed/duplicated).
    h1 = jnp.dot(hj, w1hj_ref[...], preferred_element_type=jnp.float32)
    h1 = h1 + jnp.dot(pij, w1p_ref[...], preferred_element_type=jnp.float32)
    hi = jnp.dot(hc_ref[...], w1hi_ref[...], preferred_element_type=jnp.float32)
    h1 = h1.reshape(KC, TM, H) + hi[None, :, :] + b1_ref[...]
    h1 = _leaky_relu(h1).astype(jnp.bfloat16).reshape(KC * TM, H)

    # Layers 2 & 3: bf16 MXU inputs, f32 accumulate + bias, immediate bf16
    # re-cast so f32 intermediates are short-lived.
    h2 = jnp.dot(h1, w2_ref[...], preferred_element_type=jnp.float32) + b2_ref[...]
    h2 = _leaky_relu(h2).astype(jnp.bfloat16)
    h3 = jnp.dot(h2, w3_ref[...], preferred_element_type=jnp.float32) + b3_ref[...]

    # aggr='max' over this K chunk (leading-axis VPU reduction), folded into
    # the running max across chunks.
    acc_ref[...] = jnp.maximum(acc_ref[...],
                               jnp.max(h3.reshape(KC, TM, H), axis=0))

    @pl.when(kc_idx == n_kc - 1)
    def _():
        out_ref[...] = acc_ref[...]


# ---------------------------- VMEM sizing helpers ----------------------------

def _vmem_capacity_bytes():
    try:
        info = pltpu.get_tpu_info()
        for name in ("vmem_capacity_bytes", "vmem_bytes", "vmem_size_bytes"):
            cap = getattr(info, name, None)
            if cap:
                return int(cap)
    except Exception:
        pass
    return 64 * 1024 * 1024          # conservative fallback (v7x per-core VMEM)


def _pick_tile_m(k_chunk, hdim, budget_bytes):
    """Largest row tile (multiple of 16) whose per-step VMEM footprint fits.

    Minor dims are lane-padded to 128 in VMEM; count the f32 intermediates and
    their bf16 re-cast copies explicitly (flat-sum -> conservative).
    """
    lane = 128
    hl = _round_up(hdim, lane)
    per_row = (
        2 * k_chunk * hl * 2        # double-buffered bf16 h_j block
        + 2 * k_chunk * lane * 2    # double-buffered bf16 p_ij block (3 -> 128 lanes)
        + 2 * hl * 2                # double-buffered bf16 center-h tile
        + 2 * hl * 4                # double-buffered f32 output tile
        + hl * 4                    # f32 running-max scratch
        + k_chunk * hl * (4 + 2)    # h1: f32 + bf16 re-cast
        + k_chunk * hl * (4 + 2)    # h2: f32 + bf16 re-cast
        + k_chunk * hl * 4          # h3: f32
    )
    tm = budget_bytes // per_row
    tm = max(16, min(int(tm), 2048))
    tm = (tm // 16) * 16
    return int(tm)


# ------------------------------ pallas_call glue -----------------------------

def feat_mlp_max_pallas(pij_km, hj_km, h_center,
                        w1p, w1hj, w1hi, b1, w2, b2, w3, b3,
                        *, tile_m, k_chunk):
    """pij_km: (K_pad, BN_pad, 3) bf16, hj_km: (K_pad, BN_pad, H) bf16,
       h_center: (BN_pad, H) bf16 -> (BN_pad, H) f32."""
    k_pad, bn_pad, _ = hj_km.shape
    hdim = h_center.shape[-1]
    grid = (bn_pad // tile_m, k_pad // k_chunk)
    full2 = lambda i, kc: (0, 0)

    flops = (2 * k_pad * bn_pad * (3 + 2 * hdim) * hdim
             + 2 * bn_pad * hdim * hdim * grid[1])
    bytes_accessed = (sum(int(a.size) * a.dtype.itemsize
                          for a in (pij_km, hj_km, h_center,
                                    w1p, w1hj, w1hi, b1, w2, b2, w3, b3))
                      + bn_pad * hdim * 4)

    phys_vmem = _vmem_capacity_bytes()
    vmem_limit = max(32 << 20, min(int(phys_vmem * 3 // 4), 96 << 20))

    return pl.pallas_call(
        _feat_mlp_max_kernel,
        out_shape=jax.ShapeDtypeStruct((bn_pad, hdim), jnp.float32),
        grid_spec=pltpu.PrefetchScalarGridSpec(
            num_scalar_prefetch=0,
            grid=grid,
            in_specs=[
                pl.BlockSpec((k_chunk, tile_m, 3), lambda i, kc: (kc, i, 0)),     # p_ij
                pl.BlockSpec((k_chunk, tile_m, hdim), lambda i, kc: (kc, i, 0)),  # h_j
                pl.BlockSpec((tile_m, hdim), lambda i, kc: (i, 0)),               # h (center)
                pl.BlockSpec((3, hdim), full2),        # W1 rows for p_ij
                pl.BlockSpec((hdim, hdim), full2),     # W1 rows for h_j
                pl.BlockSpec((hdim, hdim), full2),     # W1 rows for h_i
                pl.BlockSpec((1, hdim), full2),        # b1
                pl.BlockSpec((hdim, hdim), full2),     # W2
                pl.BlockSpec((1, hdim), full2),        # b2
                pl.BlockSpec((hdim, hdim), full2),     # W3
                pl.BlockSpec((1, hdim), full2),        # b3
            ],
            out_specs=pl.BlockSpec((tile_m, hdim), lambda i, kc: (i, 0)),
            scratch_shapes=[pltpu.VMEM((tile_m, hdim), jnp.float32)],
        ),
        compiler_params=pltpu.CompilerParams(
            dimension_semantics=("parallel", "arbitrary"),
            vmem_limit_bytes=vmem_limit),
        cost_estimate=pl.CostEstimate(flops=flops, transcendentals=0,
                                      bytes_accessed=bytes_accessed),
    )(pij_km, hj_km, h_center, w1p, w1hj, w1hi, b1, w2, b2, w3, b3)


# ----------------------------- module glue (JAX) -----------------------------

def knn_indices(x, k):
    """k nearest neighbors of each row within its own batch. x: (B, N, D)."""
    sq = jnp.sum(x * x, axis=-1)
    d2 = sq[:, :, None] + sq[:, None, :] - 2.0 * jnp.einsum("bnd,bmd->bnm", x, x)
    _, idx = jax.lax.top_k(-d2, k)        # includes self (distance 0), like knn_points
    return idx                             # (B, N, K)


def knn_gather(x, idx):
    """x: (B, N, D), idx: (B, N, K) -> (B, N, K, D)."""
    return jax.vmap(lambda xb, ib: xb[ib])(x, idx)


def global_to_local(R, t, q):
    """p = R^T (q - t).  R: (B,N,3,3), t: (B,N,3), q: (B,N,K,3)."""
    return jnp.einsum("bnca,bnkc->bnka", R, q - t[:, :, None, :])


def prepare_kernel_params(params, hidden_dim):
    """Split W1 into the p_ij / h_i / h_j row blocks; bf16 weights, f32 biases."""
    w1, b1, w2, b2, w3, b3 = params
    w1_p = w1[:3]                              # rows for p_ij
    w1_hi = w1[3:3 + hidden_dim]               # rows for h_i (center)
    w1_hj = w1[3 + hidden_dim:]                # rows for h_j (neighbor)
    bf, f32 = jnp.bfloat16, jnp.float32
    return (w1_p.astype(bf), w1_hj.astype(bf), w1_hi.astype(bf), b1.astype(f32),
            w2.astype(bf), b2.astype(f32), w3.astype(bf), b3.astype(f32))


def point_oriented_aggregation(p, R, h, params, k, *, tile_m=None, k_chunk=None):
    """Forward matching the PyTorch module (graph_type='hidden', mlp, aggr='max')."""
    B, N, H = h.shape
    bn = B * N

    # graph built in hidden space; convert to global (flattened-batch) row ids
    idx = knn_indices(h, k)                                             # (B, N, K)
    gidx = (idx + (jnp.arange(B, dtype=idx.dtype) * N)[:, None, None]).reshape(bn, k)

    # ---- tiling decisions, taken BEFORE the gather so the big gathered tensor
    #      is born padded and K-major (no transpose / pad / concat passes) -----
    kc = int(k_chunk) if k_chunk is not None else min(k, 8)
    kc = max(1, min(kc, k))
    k_pad = _round_up(k, kc)

    budget = min(int(_vmem_capacity_bytes() * 3 // 8), 48 << 20)
    if tile_m is None:
        tile_m = _pick_tile_m(kc, H, budget)
    tile_m = max(16, (int(tile_m) // 16) * 16)
    # keep >= 2 row tiles so ("parallel", ...) can spread across TensorCores
    tile_m = min(tile_m, max(16, _round_up((bn + 1) // 2, 16)))
    bn_pad = _round_up(bn, tile_m)

    # ---- pad only the *small* per-point tensors, then gather K-major ---------
    h_bf = h.reshape(bn, H).astype(jnp.bfloat16)
    p_flat = p.reshape(bn, 3)
    R_flat = R.reshape(bn, 3, 3)
    if k_pad != k:      # duplicate the last neighbor: max() is unchanged
        gidx = jnp.concatenate(
            [gidx, jnp.repeat(gidx[:, -1:], k_pad - k, axis=1)], axis=1)
    if bn_pad != bn:    # padded rows gather point 0; results sliced off below
        gidx = jnp.pad(gidx, ((0, bn_pad - bn), (0, 0)))
        h_bf = jnp.pad(h_bf, ((0, bn_pad - bn), (0, 0)))
        p_flat = jnp.pad(p_flat, ((0, bn_pad - bn), (0, 0)))
        R_flat = jnp.pad(R_flat, ((0, bn_pad - bn), (0, 0), (0, 0)))

    gidx_km = gidx.T                                       # (K_pad, BN_pad)
    hj_km = jnp.take(h_bf, gidx_km, axis=0)                # (K_pad, BN_pad, H) bf16
    pj_km = jnp.take(p_flat, gidx_km, axis=0)              # (K_pad, BN_pad, 3) f32
    pij_km = jnp.einsum("mca,kmc->kma", R_flat,
                        pj_km - p_flat[None, :, :]).astype(jnp.bfloat16)

    # NOTE: h_i is never materialized; its layer-1 contribution is computed
    # in-kernel directly from h (identical for every neighbor).
    kparams = prepare_kernel_params(params, H)
    out = feat_mlp_max_pallas(pij_km, hj_km, h_bf, *kparams,
                              tile_m=tile_m, k_chunk=kc)
    return out[:bn].reshape(B, N, H)


# ------------------------------- reference -----------------------------------

def reference_forward(p, R, h, params, k):
    """Pure-JAX reference with the same bf16-input / f32-accumulate matmuls."""
    B, N, hdim = h.shape
    idx = knn_indices(h, k)
    p_j = knn_gather(p, idx)
    p_ij = global_to_local(R, p, p_j)
    h_j = knn_gather(h, idx)
    h_i = jnp.broadcast_to(h[:, :, None, :], (B, N, k, hdim))
    x = jnp.concatenate([p_ij, h_i, h_j], axis=-1)
    w1, b1, w2, b2, w3, b3 = params

    def mm(a, w):
        return jnp.dot(a.astype(jnp.bfloat16), w.astype(jnp.bfloat16),
                       preferred_element_type=jnp.float32)

    x = _leaky_relu(mm(x, w1) + b1[0])
    x = _leaky_relu(mm(x, w2) + b2[0])
    x = mm(x, w3) + b3[0]
    return jnp.max(x, axis=2)


def init_params(key, hidden_dim, num_frames=1):
    in_dim = hidden_dim * 2 + 3 * num_frames
    ks = jax.random.split(key, 6)
    scale1 = 1.0 / jnp.sqrt(in_dim)
    scaleh = 1.0 / jnp.sqrt(hidden_dim)
    w1 = jax.random.uniform(ks[0], (in_dim, hidden_dim), jnp.float32, -scale1, scale1)
    b1 = jax.random.uniform(ks[1], (1, hidden_dim), jnp.float32, -scale1, scale1)
    w2 = jax.random.uniform(ks[2], (hidden_dim, hidden_dim), jnp.float32, -scaleh, scaleh)
    b2 = jax.random.uniform(ks[3], (1, hidden_dim), jnp.float32, -scaleh, scaleh)
    w3 = jax.random.uniform(ks[4], (hidden_dim, hidden_dim), jnp.float32, -scaleh, scaleh)
    b3 = jax.random.uniform(ks[5], (1, hidden_dim), jnp.float32, -scaleh, scaleh)
    return (w1, b1, w2, b2, w3, b3)


if __name__ == "__main__":
    B, N, H, K = 2, 16, 32, 8    # small shapes: batch=2, points=16, hidden=32, k=8

    key = jax.random.PRNGKey(0)
    kp, kR, kh, kw = jax.random.split(key, 4)

    p = jax.random.normal(kp, (B, N, 3), jnp.float32)
    R = jax.random.normal(kR, (B, N, 3, 3), jnp.float32)   # synthetic local frames
    h = jax.random.normal(kh, (B, N, H), jnp.float32)

    params = init_params(kw, H)

    fwd = jax.jit(functools.partial(point_oriented_aggregation, k=K))
    out = fwd(p, R, h, params)
    out = jax.block_until_ready(out)

    ref = reference_forward(p, R, h, params, K)
    assert out.shape == (B, N, H)
    assert jnp.allclose(out, ref, atol=2e-3, rtol=2e-3), "mismatch vs JAX reference"

    print("KERNEL_OK")
</pallas_src>

<mosaic_0001>
module attributes {stable_mosaic.version = 11 : i64} {
  func.func @_feat_mlp_max_kernel(%arg0: i32, %arg1: i32, %arg2: memref<8x16x3xbf16, #tpu.memory_space<vmem>>, %arg3: memref<8x16x32xbf16, #tpu.memory_space<vmem>>, %arg4: memref<16x32xbf16, #tpu.memory_space<vmem>>, %arg5: memref<3x32xbf16, #tpu.memory_space<vmem>>, %arg6: memref<32x32xbf16, #tpu.memory_space<vmem>>, %arg7: memref<32x32xbf16, #tpu.memory_space<vmem>>, %arg8: memref<1x32xf32, #tpu.memory_space<vmem>>, %arg9: memref<32x32xbf16, #tpu.memory_space<vmem>>, %arg10: memref<1x32xf32, #tpu.memory_space<vmem>>, %arg11: memref<32x32xbf16, #tpu.memory_space<vmem>>, %arg12: memref<1x32xf32, #tpu.memory_space<vmem>>, %arg13: memref<16x32xf32, #tpu.memory_space<vmem>>, %arg14: memref<16x32xf32, #tpu.memory_space<vmem>>) attributes {dimension_semantics = [#tpu.dimension_semantics<parallel>, #tpu.dimension_semantics<arbitrary>], iteration_bounds = array<i64: 2, 1>, scalar_prefetch = 0 : i64, scratch_operands = 1 : i64, tpu.core_type = #tpu.core_type<tc>, window_params = [{transform_indices = @transform_0, window_bounds = array<i64: 8, 16, 3>}, {transform_indices = @transform_1, window_bounds = array<i64: 8, 16, 32>}, {transform_indices = @transform_2, window_bounds = array<i64: 16, 32>}, {pipeline_mode = #tpu.pipeline_mode<synchronous>, transform_indices = @transform_3, window_bounds = array<i64: 3, 32>}, {pipeline_mode = #tpu.pipeline_mode<synchronous>, transform_indices = @transform_4, window_bounds = array<i64: 32, 32>}, {pipeline_mode = #tpu.pipeline_mode<synchronous>, transform_indices = @transform_5, window_bounds = array<i64: 32, 32>}, {pipeline_mode = #tpu.pipeline_mode<synchronous>, transform_indices = @transform_6, window_bounds = array<i64: 1, 32>}, {pipeline_mode = #tpu.pipeline_mode<synchronous>, transform_indices = @transform_7, window_bounds = array<i64: 32, 32>}, {pipeline_mode = #tpu.pipeline_mode<synchronous>, transform_indices = @transform_8, window_bounds = array<i64: 1, 32>}, {pipeline_mode = #tpu.pipeline_mode<synchronous>, transform_indices = @transform_9, window_bounds = array<i64: 32, 32>}, {pipeline_mode = #tpu.pipeline_mode<synchronous>, transform_indices = @transform_10, window_bounds = array<i64: 1, 32>}, {transform_indices = @transform_11, window_bounds = array<i64: 16, 32>}]} {
    %c0_i32 = arith.constant 0 : i32
    %0 = arith.cmpi eq, %arg1, %c0_i32 : i32
    %1 = arith.extui %0 : i1 to i32
    %c0_i32_0 = arith.constant 0 : i32
    %2 = arith.cmpi ne, %1, %c0_i32_0 : i32
    scf.if %2 {
      %cst_39 = arith.constant 0xFF800000 : f32
      %54 = vector.broadcast %cst_39 : f32 to vector<16x32xf32>
      %c0_40 = arith.constant 0 : index
      %c0_41 = arith.constant 0 : index
      %55 = vector.load %arg14[%c0_40, %c0_41] : memref<16x32xf32, #tpu.memory_space<vmem>>, vector<16x32xf32>
      tpu.vector_store %arg14[%c0_40, %c0_41], %54 {strides = array<i32>} : memref<16x32xf32, #tpu.memory_space<vmem>>, vector<16x32xf32>,
    } else {
    }
    %c0 = arith.constant 0 : index
    %c0_1 = arith.constant 0 : index
    %c0_2 = arith.constant 0 : index
    %3 = vector.load %arg3[%c0, %c0_1, %c0_2] : memref<8x16x32xbf16, #tpu.memory_space<vmem>>, vector<8x16x32xbf16>
    %4 = vector.shape_cast %3 : vector<8x16x32xbf16> to vector<128x32xbf16>
    %c0_3 = arith.constant 0 : index
    %c0_4 = arith.constant 0 : index
    %c0_5 = arith.constant 0 : index
    %5 = vector.load %arg2[%c0_3, %c0_4, %c0_5] : memref<8x16x3xbf16, #tpu.memory_space<vmem>>, vector<8x16x3xbf16>
    %6 = vector.shape_cast %5 : vector<8x16x3xbf16> to vector<128x3xbf16>
    %c0_6 = arith.constant 0 : index
    %c0_7 = arith.constant 0 : index
    %7 = vector.load %arg6[%c0_6, %c0_7] : memref<32x32xbf16, #tpu.memory_space<vmem>>, vector<32x32xbf16>
    %cst = arith.constant dense<0.000000e+00> : vector<128x32xf32>
    %8 = tpu.matmul %4, %7, %cst {dimension_numbers = #tpu.dot_dimension_numbers<[1], [0], [0], [1], [0, 0, 1, 1], [], []>} : vector<128x32xbf16>, vector<32x32xbf16>, vector<128x32xf32> -> vector<128x32xf32>
    %c0_8 = arith.constant 0 : index
    %c0_9 = arith.constant 0 : index
    %9 = vector.load %arg5[%c0_8, %c0_9] : memref<3x32xbf16, #tpu.memory_space<vmem>>, vector<3x32xbf16>
    %cst_10 = arith.constant dense<0.000000e+00> : vector<128x32xf32>
    %10 = tpu.matmul %6, %9, %cst_10 {dimension_numbers = #tpu.dot_dimension_numbers<[1], [0], [0], [1], [0, 0, 1, 1], [], []>} : vector<128x3xbf16>, vector<3x32xbf16>, vector<128x32xf32> -> vector<128x32xf32>
    %11 = arith.addf %8, %10 : vector<128x32xf32>
    %c0_11 = arith.constant 0 : index
    %c0_12 = arith.constant 0 : index
    %12 = vector.load %arg4[%c0_11, %c0_12] : memref<16x32xbf16, #tpu.memory_space<vmem>>, vector<16x32xbf16>
    %c0_13 = arith.constant 0 : index
    %c0_14 = arith.constant 0 : index
    %13 = vector.load %arg7[%c0_13, %c0_14] : memref<32x32xbf16, #tpu.memory_space<vmem>>, vector<32x32xbf16>
    %cst_15 = arith.constant dense<0.000000e+00> : vector<16x32xf32>
    %14 = tpu.matmul %12, %13, %cst_15 {dimension_numbers = #tpu.dot_dimension_numbers<[1], [0], [0], [1], [0, 0, 1, 1], [], []>} : vector<16x32xbf16>, vector<32x32xbf16>, vector<16x32xf32> -> vector<16x32xf32>
    %15 = vector.shape_cast %11 : vector<128x32xf32> to vector<8x16x32xf32>
    %16 = vector.shape_cast %14 : vector<16x32xf32> to vector<1x16x32xf32>
    %17 = vector.broadcast %16 : vector<1x16x32xf32> to vector<8x16x32xf32>
    %18 = arith.addf %15, %17 : vector<8x16x32xf32>
    %c0_16 = arith.constant 0 : index
    %c0_17 = arith.constant 0 : index
    %19 = vector.load %arg8[%c0_16, %c0_17] : memref<1x32xf32, #tpu.memory_space<vmem>>, vector<1x32xf32>
    %20 = vector.shape_cast %19 : vector<1x32xf32> to vector<1x1x32xf32>
    %21 = vector.broadcast %20 : vector<1x1x32xf32> to vector<8x16x32xf32>
    %22 = arith.addf %18, %21 : vector<8x16x32xf32>
    %cst_18 = arith.constant 0.000000e+00 : f32
    %23 = vector.broadcast %cst_18 : f32 to vector<8x16x32xf32>
    %24 = arith.cmpf oge, %22, %23 : vector<8x16x32xf32>
    %cst_19 = arith.constant 1.000000e-01 : f32
    %25 = vector.broadcast %cst_19 : f32 to vector<8x16x32xf32>
    %26 = arith.mulf %25, %22 : vector<8x16x32xf32>
    %27 = arith.select %24, %22, %26 : vector<8x16x32xi1>, vector<8x16x32xf32>
    %28 = arith.truncf %27 : vector<8x16x32xf32> to vector<8x16x32xbf16>
    %29 = vector.shape_cast %28 : vector<8x16x32xbf16> to vector<128x32xbf16>
    %c0_20 = arith.constant 0 : index
    %c0_21 = arith.constant 0 : index
    %30 = vector.load %arg9[%c0_20, %c0_21] : memref<32x32xbf16, #tpu.memory_space<vmem>>, vector<32x32xbf16>
    %cst_22 = arith.constant dense<0.000000e+00> : vector<128x32xf32>
    %31 = tpu.matmul %29, %30, %cst_22 {dimension_numbers = #tpu.dot_dimension_numbers<[1], [0], [0], [1], [0, 0, 1, 1], [], []>} : vector<128x32xbf16>, vector<32x32xbf16>, vector<128x32xf32> -> vector<128x32xf32>
    %c0_23 = arith.constant 0 : index
    %c0_24 = arith.constant 0 : index
    %32 = vector.load %arg10[%c0_23, %c0_24] : memref<1x32xf32, #tpu.memory_space<vmem>>, vector<1x32xf32>
    %33 = vector.broadcast %32 : vector<1x32xf32> to vector<128x32xf32>
    %34 = arith.addf %31, %33 : vector<128x32xf32>
    %cst_25 = arith.constant 0.000000e+00 : f32
    %35 = vector.broadcast %cst_25 : f32 to vector<128x32xf32>
    %36 = arith.cmpf oge, %34, %35 : vector<128x32xf32>
    %cst_26 = arith.constant 1.000000e-01 : f32
    %37 = vector.broadcast %cst_26 : f32 to vector<128x32xf32>
    %38 = arith.mulf %37, %34 : vector<128x32xf32>
    %39 = arith.select %36, %34, %38 : vector<128x32xi1>, vector<128x32xf32>
    %40 = arith.truncf %39 : vector<128x32xf32> to vector<128x32xbf16>
    %c0_27 = arith.constant 0 : index
    %c0_28 = arith.constant 0 : index
    %41 = vector.load %arg11[%c0_27, %c0_28] : memref<32x32xbf16, #tpu.memory_space<vmem>>, vector<32x32xbf16>
    %cst_29 = arith.constant dense<0.000000e+00> : vector<128x32xf32>
    %42 = tpu.matmul %40, %41, %cst_29 {dimension_numbers = #tpu.dot_dimension_numbers<[1], [0], [0], [1], [0, 0, 1, 1], [], []>} : vector<128x32xbf16>, vector<32x32xbf16>, vector<128x32xf32> -> vector<128x32xf32>
    %c0_30 = arith.constant 0 : index
    %c0_31 = arith.constant 0 : index
    %43 = vector.load %arg12[%c0_30, %c0_31] : memref<1x32xf32, #tpu.memory_space<vmem>>, vector<1x32xf32>
    %44 = vector.broadcast %43 : vector<1x32xf32> to vector<128x32xf32>
    %45 = arith.addf %42, %44 : vector<128x32xf32>
    %c0_32 = arith.constant 0 : index
    %c0_33 = arith.constant 0 : index
    %46 = vector.load %arg14[%c0_32, %c0_33] : memref<16x32xf32, #tpu.memory_space<vmem>>, vector<16x32xf32>
    %47 = vector.shape_cast %45 : vector<128x32xf32> to vector<8x16x32xf32>
    %cst_34 = arith.constant dense<0xFF800000> : vector<16x32xf32>
    %48 = vector.multi_reduction <maximumf>, %47, %cst_34 [0] : vector<8x16x32xf32> to vector<16x32xf32>
    %49 = arith.maximumf %46, %48 : vector<16x32xf32>
    %c0_35 = arith.constant 0 : index
    %c0_36 = arith.constant 0 : index
    %50 = vector.load %arg14[%c0_35, %c0_36] : memref<16x32xf32, #tpu.memory_space<vmem>>, vector<16x32xf32>
    tpu.vector_store %arg14[%c0_35, %c0_36], %49 {strides = array<i32>} : memref<16x32xf32, #tpu.memory_space<vmem>>, vector<16x32xf32>,
    %c0_i32_37 = arith.constant 0 : i32
    %51 = arith.cmpi eq, %arg1, %c0_i32_37 : i32
    %52 = arith.extui %51 : i1 to i32
    %c0_i32_38 = arith.constant 0 : i32
    %53 = arith.cmpi ne, %52, %c0_i32_38 : i32
    scf.if %53 {
      %c0_39 = arith.constant 0 : index
      %c0_40 = arith.constant 0 : index
      %54 = vector.load %arg14[%c0_39, %c0_40] : memref<16x32xf32, #tpu.memory_space<vmem>>, vector<16x32xf32>
      %c0_41 = arith.constant 0 : index
      %c0_42 = arith.constant 0 : index
      %55 = vector.load %arg13[%c0_41, %c0_42] : memref<16x32xf32, #tpu.memory_space<vmem>>, vector<16x32xf32>
      tpu.vector_store %arg13[%c0_41, %c0_42], %54 {strides = array<i32>} : memref<16x32xf32, #tpu.memory_space<vmem>>, vector<16x32xf32>,
    } else {
    }
    return
  }
  func.func @transform_0(%arg0: i32, %arg1: i32) -> (i32, i32, i32) {
    %c0_i32 = arith.constant 0 : i32
    %c0_i32_0 = arith.constant 0 : i32
    return %arg1, %arg0, %c0_i32 : i32, i32, i32
  }
  func.func @transform_1(%arg0: i32, %arg1: i32) -> (i32, i32, i32) {
    %c0_i32 = arith.constant 0 : i32
    %c0_i32_0 = arith.constant 0 : i32
    return %arg1, %arg0, %c0_i32 : i32, i32, i32
  }
  func.func @transform_2(%arg0: i32, %arg1: i32) -> (i32, i32) {
    %c0_i32 = arith.constant 0 : i32
    %c0_i32_0 = arith.constant 0 : i32
    return %arg0, %c0_i32 : i32, i32
  }
  func.func @transform_3(%arg0: i32, %arg1: i32) -> (i32, i32) {
    %c0_i32 = arith.constant 0 : i32
    %c0_i32_0 = arith.constant 0 : i32
    %c0_i32_1 = arith.constant 0 : i32
    return %c0_i32, %c0_i32_0 : i32, i32
  }
  func.func @transform_4(%arg0: i32, %arg1: i32) -> (i32, i32) {
    %c0_i32 = arith.constant 0 : i32
    %c0_i32_0 = arith.constant 0 : i32
    %c0_i32_1 = arith.constant 0 : i32
    return %c0_i32, %c0_i32_0 : i32, i32
  }
  func.func @transform_5(%arg0: i32, %arg1: i32) -> (i32, i32) {
    %c0_i32 = arith.constant 0 : i32
    %c0_i32_0 = arith.constant 0 : i32
    %c0_i32_1 = arith.constant 0 : i32
    return %c0_i32, %c0_i32_0 : i32, i32
  }
  func.func @transform_6(%arg0: i32, %arg1: i32) -> (i32, i32) {
    %c0_i32 = arith.constant 0 : i32
    %c0_i32_0 = arith.constant 0 : i32
    %c0_i32_1 = arith.constant 0 : i32
    return %c0_i32, %c0_i32_0 : i32, i32
  }
  func.func @transform_7(%arg0: i32, %arg1: i32) -> (i32, i32) {
    %c0_i32 = arith.constant 0 : i32
    %c0_i32_0 = arith.constant 0 : i32
    %c0_i32_1 = arith.constant 0 : i32
    return %c0_i32, %c0_i32_0 : i32, i32
  }
  func.func @transform_8(%arg0: i32, %arg1: i32) -> (i32, i32) {
    %c0_i32 = arith.constant 0 : i32
    %c0_i32_0 = arith.constant 0 : i32
    %c0_i32_1 = arith.constant 0 : i32
    return %c0_i32, %c0_i32_0 : i32, i32
  }
  func.func @transform_9(%arg0: i32, %arg1: i32) -> (i32, i32) {
    %c0_i32 = arith.constant 0 : i32
    %c0_i32_0 = arith.constant 0 : i32
    %c0_i32_1 = arith.constant 0 : i32
    return %c0_i32, %c0_i32_0 : i32, i32
  }
  func.func @transform_10(%arg0: i32, %arg1: i32) -> (i32, i32) {
    %c0_i32 = arith.constant 0 : i32
    %c0_i32_0 = arith.constant 0 : i32
    %c0_i32_1 = arith.constant 0 : i32
    return %c0_i32, %c0_i32_0 : i32, i32
  }
  func.func @transform_11(%arg0: i32, %arg1: i32) -> (i32, i32) {
    %c0_i32 = arith.constant 0 : i32
    %c0_i32_0 = arith.constant 0 : i32
    return %arg0, %c0_i32 : i32, i32
  }
}

</mosaic_0001>

<bundles_post_ra>
// kernel: point_oriented_aggregation.1
= control target key start
LH: loop header
LB: loop body
LE: loop exit
PB: predicated region body
PF: predicated region fallthrough
CT: control target
= control target key end

     0   :  { %s2487_s0 = inlined_call_operand.vmem [shape: bf16[8,32,3], index: 0, kind: input, shape index: {}]   ;;  %s2488_s1 = inlined_call_operand.vmem [shape: bf16[8,32,32], index: 1, kind: input, shape index: {}]   ;;  %s2489_s2 = inlined_call_operand.vmem [shape: bf16[32,32], index: 2, kind: input, shape index: {}]   ;;  %s2490_s3 = inlined_call_operand.vmem [shape: bf16[3,32], index: 3, kind: input, shape index: {}]   ;;  %s2491_s4 = inlined_call_operand.vmem [shape: bf16[32,32], index: 4, kind: input, shape index: {}]   ;;  %s2492_s5 = inlined_call_operand.vmem [shape: bf16[32,32], index: 5, kind: input, shape index: {}]   ;;  %s2493_s6 = inlined_call_operand.vmem [shape: f32[1,32], index: 6, kind: input, shape index: {}]   ;;  %s2494_s7 = inlined_call_operand.vmem [shape: bf16[32,32], index: 7, kind: input, shape index: {}]   ;;  %s2495_s8 = inlined_call_operand.vmem [shape: f32[1,32], index: 8, kind: input, shape index: {}]   ;;  %s2496_s9 = inlined_call_operand.vmem [shape: bf16[32,32], index: 9, kind: input, shape index: {}]   ;;  %s2497_s10 = inlined_call_operand.vmem [shape: f32[1,32], index: 10, kind: input, shape index: {}]   ;;  %s2498_s11 = inlined_call_operand.hbm [shape: f32[32,32], index: 11, kind: output, shape index: {}]  }
   0x1   :  { %2499 = sst [smem:[#allocation8_spill]] %s2487_s0 }
   0x2   :  { %2500 = sst [smem:[#allocation9_spill]] %s2488_s1 }
   0x3   :  { %16 = vsyncpa [#allocation6], 0 }
   0x4   :  { %18 = vsyncpa [#allocation6 + $0x1], 0  ;;  %s2183_s17 = smov 0   ;;  %s2185_s18 = smov 0  }
   0x5   :  { %s2187_s19 = smov 0   ;;  %s2189_s20 = smov 0  }
   0x6   :  { %s2191_s21 = smov 0   ;;  %s2193_s22 = smov 0  }
   0x7 LB: > { %s1721_s23 = sadd.s32 4294967295, %s2114_s22   ;;  %s1722_s24 = sadd.s32 4294967294, %s2114_s22   ;;  %s2114_s22 = sphi %s2193_s22, %s24_s22   ;;  %s2110_s21 = sphi %s2191_s21, %s2511_s21   ;;  %s2106_s20 = sphi %s2189_s20, %s2510_s20   ;;  %s2102_s19 = sphi %s2187_s19, %s2509_s19   ;;  %s2098_s18 = sphi %s2185_s18, %s2508_s18   ;;  %s2094_s17 = sphi %s2183_s17, %s2507_s17  }
   0x8   : > { %s36_s25 = sadd.s32 1, %s2110_s21  ;;  %s45_s26 = sadd.s32 1, %s2102_s19 }
   0x9   : > { %p38_p0 = scmp.ge.s32.totalorder %s36_s25, 2  ;;  %p52_p1 = scmp.ne.s32.totalorder %s2102_s19, %s2098_s18 }
   0xa   : > { %p53_p2 = scmp.eq.s32.totalorder %s2114_s22, 0  ;;  %p304_p3 = scmp.eq.s32.totalorder %s1721_s23, 1 }
   0xb   : > { %s2513_s25 = smov (%p38_p0, %s36_s25), 0  ;;  %p309_p6 = scmp.ne.s32.totalorder %s2098_s18, %s2094_s17 }
   0xc   : > { %p2222_p4 = por %p53_p2, %p52_p1  ;;  %p2226_p5 = por %p304_p3, %p52_p1 }
   0xd   : > { %s41_s29 = ssub.s32 %s2110_s21, %s2513_s25  ;;  %p310_p8 = scmp.eq.s32.totalorder %s1722_s24, 1 }
   0xe   : > { %p43_p7 = scmp.eq.s32.totalorder %s41_s29, 0  ;;  %p1724_p10 = scmp.ge.s32.totalorder %s2114_s22, 2 }
   0xf   : > { %p2237_p9 = por %p310_p8, %p309_p6 }
  0x10   : > { %s2235_s30 = scalar_select %p43_p7, %s2102_s19, %s45_s26  }
  0x11   : > { %350 = sbr.rel (%p1724_p10) target bundleno = 52 (0x34), region = 48 }
  0x18   : > { %353 = sbr.rel (!%p2222_p4) target bundleno = 38 (0x26), region = 52  ;;  %s355_s13 = sand.u32 (%p2222_p4), 1, %s2102_s19  }
  0x19   : > { %s1803_s14 = sshll.u32 (%p2222_p4), %s2110_s21, 3  ;;  %s1725_s15 = sshll.u32 (%p2222_p4), %s355_s13, 6 }
  0x1a   : > { %s2504_s0 = sld [smem:[#allocation8_spill]] (%p2222_p4)  ;;  %s357_s26 = scalar_lea.vmem (%p2222_p4), [#allocation3], %s1725_s15 }
  0x20   : > { %s363_s24 = scalar_lea.vmem %s2504_s0, %s1803_s14 }
  0x21   : > { %v379_v0 = vld [vmem:[%s363_s24] sm:$0xff]   ;;  %v383_v1 = vld [vmem:[%s363_s24 + $0x10] sm:$0xff]  }
  0x22   : > { %v387_v2 = vld [vmem:[%s363_s24 + $0x20] sm:$0xff]   ;;  %380 = vst [vmem:[%s357_s26] sm:$0xff] %v379_v0   ;;  %384 = vst [vmem:[%s357_s26 + $0x8] sm:$0xff] %v383_v1   ;;  %v391_v3 = vld [vmem:[%s363_s24 + $0x30] sm:$0xff]  }
  0x23   : > { %388 = vst [vmem:[%s357_s26 + $0x10] sm:$0xff] %v387_v2   ;;  %v395_v4 = vld [vmem:[%s363_s24 + $0x40] sm:$0xff]   ;;  %v399_v5 = vld [vmem:[%s363_s24 + $0x50] sm:$0xff]   ;;  %392 = vst [vmem:[%s357_s26 + $0x18] sm:$0xff] %v391_v3  }
  0x24   : > { %396 = vst [vmem:[%s357_s26 + $0x20] sm:$0xff] %v395_v4   ;;  %400 = vst [vmem:[%s357_s26 + $0x28] sm:$0xff] %v399_v5   ;;  %v403_v6 = vld [vmem:[%s363_s24 + $0x60] sm:$0xff]   ;;  %v407_v7 = vld [vmem:[%s363_s24 + $0x70] sm:$0xff]  }
  0x25   : > { %404 = vst [vmem:[%s357_s26 + $0x30] sm:$0xff] %v403_v6   ;;  %408 = vst [vmem:[%s357_s26 + $0x38] sm:$0xff] %v407_v7  }
  0x26 PF: > { %465 = sbr.rel (!%p2222_p4) target bundleno = 52 (0x34), region = 93  ;;  %s467_s29 = sand.u32 (%p2222_p4), 1, %s2102_s19  }
  0x27   : > { %s1804_s13 = sshll.u32 (%p2222_p4), %s2110_s21, 3  ;;  %s1728_s14 = sshll.u32 (%p2222_p4), %s467_s29, 6 }
  0x28   : > { %s2505_s1 = sld [smem:[#allocation9_spill]] (%p2222_p4)  ;;  %s469_s0 = scalar_lea.vmem (%p2222_p4), [#allocation4], %s1728_s14 }
  0x2e   : > { %s475_s23 = scalar_lea.vmem %s2505_s1, %s1804_s13 }
  0x2f   : > { %v491_v8 = vld [vmem:[%s475_s23] sm:$0xff]   ;;  %v495_v9 = vld [vmem:[%s475_s23 + $0x10] sm:$0xff]  }
  0x30   : > { %v499_v10 = vld [vmem:[%s475_s23 + $0x20] sm:$0xff]   ;;  %492 = vst [vmem:[%s469_s0] sm:$0xff] %v491_v8   ;;  %496 = vst [vmem:[%s469_s0 + $0x8] sm:$0xff] %v495_v9   ;;  %v503_v11 = vld [vmem:[%s475_s23 + $0x30] sm:$0xff]  }
  0x31   : > { %500 = vst [vmem:[%s469_s0 + $0x10] sm:$0xff] %v499_v10   ;;  %v507_v12 = vld [vmem:[%s475_s23 + $0x40] sm:$0xff]   ;;  %v511_v13 = vld [vmem:[%s475_s23 + $0x50] sm:$0xff]   ;;  %504 = vst [vmem:[%s469_s0 + $0x18] sm:$0xff] %v503_v11  }
  0x32   : > { %508 = vst [vmem:[%s469_s0 + $0x20] sm:$0xff] %v507_v12   ;;  %512 = vst [vmem:[%s469_s0 + $0x28] sm:$0xff] %v511_v13   ;;  %v515_v14 = vld [vmem:[%s475_s23 + $0x60] sm:$0xff]   ;;  %v519_v15 = vld [vmem:[%s475_s23 + $0x70] sm:$0xff]  }
  0x33   : > { %516 = vst [vmem:[%s469_s0 + $0x30] sm:$0xff] %v515_v14   ;;  %520 = vst [vmem:[%s469_s0 + $0x38] sm:$0xff] %v519_v15  }
  0x34 PF: > { %p1731_p11 = scmp.ge.s32.totalorder %s2114_s22, 1  ;;  %p585_p12 = scmp.lt.s32.totalorder %s2114_s22, 3 }
  0x36   : > { %p586_p13 = pnand %p1731_p11, %p585_p12 }
  0x37   : > { %v702_v16 = vld [vmem:[%s2490_s3] sm:$0x3] (!%p586_p13)  ;;  %vm768_vm0 = vcmask (!%p586_p13), 1040384   ;;  %vm769_vm1 = vcmask (!%p586_p13), 1041408   ;;  %s2264_s26 = sand.u32 (!%p586_p13), 1, %s2098_s18   ;;  %v2116_v17 = vmov (!%p586_p13), 65535  }
  0x38   : > { %589 = sbr.rel (%p586_p13) target bundleno = 847 (0x34f), region = 138  ;;  %v770_v18 = vsel (!%p586_p13), %vm768_vm0, 4294967295, %v2116_v17  ;;  %s1732_s0 = sshll.u32 (!%p586_p13), %s2264_s26, 6  ;;  %vm743_vm2 = vcmask (!%p586_p13), 23552   ;;  %v2013_v20 = vld [vmem:[%s2491_s4] sm:$0xff] (!%p586_p13)   ;;  %v2018_v25 = vld [vmem:[%s2491_s4 + $0x8] sm:$0xff] (!%p586_p13)  }
  0x39   : > { %v771_v19 = vsel (!%p586_p13), %vm769_vm1, %v770_v18, 0  ;;  %s594_s14 = scalar_lea.vmem (!%p586_p13), [#allocation3], %s1732_s0  ;;  %s1735_s15 = sshll.u32 (!%p586_p13), %s2106_s20, 1  ;;  %v2117_v28 = vmov (!%p586_p13), 0.0   ;;  %vm663_vm3 = vcmask (!%p586_p13), 261120   ;;  %v2023_v34 = vld [vmem:[%s2492_s5] sm:$0xff] (!%p586_p13)  }
  0x3a   : > { %v773_v21 = vand.u32 (!%p586_p13), %v771_v19, %v702_v16  ;;  %v2011_v22 = vld [vmem:[%s594_s14] sm:$0xff] (!%p586_p13)   ;;  %v2012_v23 = vld [vmem:[%s594_s14 + $0x8] sm:$0xff] (!%p586_p13)   ;;  %v2014_v24 = vld [vmem:[%s594_s14 + $0x10] sm:$0xff] (!%p586_p13)   ;;  %p652_p0 = scmp.lt.s32.totalorder (!%p586_p13), %s1735_s15, 3  ;;  %s2277_s27 = scalar_lea.vmem (!%p586_p13), [#allocation4], %s1732_s0  ;;  %vm2118_vm4 = vmmov (!%p586_p13), 0  }
  0x3b   : > { %1850 = vmatprep.mubr.msk.bf16.mxu0 (!%p586_p13), %vm743_vm2, %v2011_v22  ;;  %v2015_v26 = vld [vmem:[%s594_s14 + $0x18] sm:$0xff] (!%p586_p13)   ;;  %v2016_v27 = vld [vmem:[%s594_s14 + $0x20] sm:$0xff] (!%p586_p13)   ;;  %v2017_v29 = vld [vmem:[%s594_s14 + $0x28] sm:$0xff] (!%p586_p13)  }
  0x3c   : > { %1848 = vmatprep.subr.bf16.mxu0 (!%p586_p13), %v773_v21  ;;  %v2019_v30 = vld [vmem:[%s594_s14 + $0x30] sm:$0xff] (!%p586_p13)   ;;  %v2020_v31 = vld [vmem:[%s594_s14 + $0x38] sm:$0xff] (!%p586_p13)   ;;  %v2021_v32 = vld [vmem:[%s2277_s27] sm:$0xff] (!%p586_p13)  }
  0x3d   : > { %1849 = vmatpush3.bf16.msra.mxu0 (!%p586_p13), %v773_v21  ;;  %v2022_v33 = vld [vmem:[%s2277_s27 + $0x8] sm:$0xff] (!%p586_p13)   ;;  %v2024_v35 = vld [vmem:[%s2277_s27 + $0x10] sm:$0xff] (!%p586_p13)   ;;  %v2028_v36 = vld [vmem:[%s2492_s5 + $0x8] sm:$0xff] (!%p586_p13)  }
  0x3e   : > { %1866 = vmatprep.subr.bf16.mxu0 (!%p586_p13), %v2013_v20  ;;  %v2025_v37 = vld [vmem:[%s2277_s27 + $0x18] sm:$0xff] (!%p586_p13)   ;;  %v2026_v38 = vld [vmem:[%s2277_s27 + $0x20] sm:$0xff] (!%p586_p13)   ;;  %v2027_v39 = vld [vmem:[%s2277_s27 + $0x28] sm:$0xff] (!%p586_p13)  }
  0x3f   : > { %s2515_s15 = smov (!%p652_p0, %s1735_s15), 3  ;;  %v2029_v40 = vld [vmem:[%s2277_s27 + $0x30] sm:$0xff]   ;;  %v2030_v41 = vld [vmem:[%s2277_s27 + $0x38] sm:$0xff]   ;;  %s2120_s27 = smov [#allocation5]  }
  0x40   : > { %1851 = vmatmul.mubr.msk.bf16.vlgmr.msra.gmra.mrb[0].mxu0 %vm743_vm2, %v2012_v23  ;;  %s1736_s24 = sshll.u32 %s2515_s15, 2  ;;  %v2032_v43 = vld [vmem:[%s2494_s7] sm:$0xff]   ;;  %v2033_v44 = vld [vmem:[%s2494_s7 + $0x8] sm:$0xff]   ;;  %s1734_s15 = sshll.u32 %s2264_s26, 4 }
  0x41   : > { %1867 = vmatpush3.bf16.msra.mxu0 %v2013_v20  ;;  %1854 = vmatprep.mubr.msk.bf16.mxu0 %vm743_vm2, %v2014_v24  ;;  %s2284_s16 = scalar_lea.vmem %s2489_s2, %s1736_s24  ;;  %v2322_v45 = vld [vmem:[%s2496_s9] sm:$0xff]   ;;  %s646_s14 = scalar_lea.vmem [#allocation5], %s1734_s15 }
  0x42   : > { %1868 = vmatprep.subr.bf16.mxu0 %v2018_v25  ;;  %v2031_v42 = vld [vmem:[%s2284_s16] sm:$0xff]   ;;  %1894 = vmatprep.subr.bf16.mxu1 %v2032_v43  ;;  %s1805_s16 = sshll.u32 %s2106_s20, 8  ;;  %s1609_s23 = sshll.u32 %s646_s14, 4  ;;  %s2436_s23 = int_to_ptr.vmem [resolvable:$true] %s1609_s23 }
  0x43   : > { %1895 = vmatpush3.bf16.msra.mxu1 %v2032_v43  ;;  %v2332_v63 = vld [vmem:[%s2493_s6] ss:$0 sm:$0xff]  ;;  %s2434_s13 = scalar_lea.hbm %s2498_s11, %s1805_s16  ;;  %s2036_s20 = scalar_lea.vmem %s2436_s23, 256 }
  0x44   : > { %1896 = vmatprep.subr.bf16.mxu1 %v2033_v44  ;;  %p2037_p1 = scmp.ne.s32.totalorder %s2436_s23, %s2036_s20  ;;  %s2040_s15 = sshll.u32 %s2120_s27, 4  ;;  %s2041_s15 = int_to_ptr.vmem [resolvable:$false] %s2040_s15 }
  0x45   : > { %1869 = vmatpush3.bf16.msra.mxu0 %v2018_v25  ;;  %s2042_s16 = scalar_lea.vmem %s2041_s15, 512  ;;  %p2043_p4 = scmp.lt.s32.totalorder %s2436_s23, %s2041_s15 }
  0x46   : > { %1886 = vmatprep.subr.bf16.mxu0 %v2117_v28  ;;  %p2038_p2 = pnand %p2037_p1, %p2226_p5  ;;  %p2044_p6 = scmp.lt.s32.totalorder %s2042_s16, %s2036_s20 }
  0x47   : > { %1897 = vmatpush3.bf16.msra.mxu1 %v2033_v44 }
  0x48   : > { %1855 = vmatmul.mubr.msk.bf16.gmra.mrb[4].mxu0 %vm743_vm2, %v2015_v26  ;;  %1914 = vmatprep.subr.bf16.mxu1 %v2322_v45  ;;  %p2039_p3 = pneg %p2038_p2  ;;  %p2045_p7 = por %p2044_p6, %p2043_p4 }
  0x49   : > { %1858 = vmatprep.mubr.msk.bf16.mxu0 %vm743_vm2, %v2016_v27 }
  0x4a   : > { %p2046_p8 = pnand %p2045_p7, %p2039_p3 }
  0x50   : > { %1859 = vmatmul.mubr.msk.bf16.gmra.mrb[8].mxu0 %vm743_vm2, %v2017_v29 }
  0x51   : > { %1862 = vmatprep.mubr.msk.bf16.mxu0 %vm743_vm2, %v2019_v30 }
  0x58   : > { %1863 = vmatmul.mubr.msk.bf16.gmra.mrb[12].mxu0 %vm743_vm2, %v2020_v31 }
  0x59   : > { %1870 = vmatprep.mubr.msk.bf16.mxu0 %vm663_vm3, %v2021_v32 }
  0x60   : > { %1871 = vmatmul.mubr.msk.bf16.vlgmr.msra.gmra.mrb[0].mxu0 %vm663_vm3, %v2022_v33 }
  0x61   : > { %1887 = vmatpush3.bf16.msra.mxu0 %v2023_v34  ;;  %1874 = vmatprep.mubr.msk.bf16.mxu0 %vm663_vm3, %v2024_v35 }
  0x62   : > { %1888 = vmatprep.subr.bf16.mxu0 %v2117_v28 }
  0x65   : > { %1889 = vmatpush3.bf16.msra.mxu0 %v2028_v36 }
  0x68   : > { %1875 = vmatmul.mubr.msk.bf16.gmra.mrb[4].mxu0 %vm663_vm3, %v2025_v37 }
  0x69   : > { %1878 = vmatprep.mubr.msk.bf16.mxu0 %vm663_vm3, %v2026_v38 }
  0x70   : > { %1879 = vmatmul.mubr.msk.bf16.gmra.mrb[8].mxu0 %vm663_vm3, %v2027_v39  ;;  %v2035_v39 = vld [vmem:[%s2496_s9 + $0x8] sm:$0xff]  }
  0x71   : > { %1882 = vmatprep.mubr.msk.bf16.mxu0 %vm663_vm3, %v2029_v40 }
  0x78   : > { %1883 = vmatmul.mubr.msk.bf16.gmra.mrb[12].mxu0 %vm663_vm3, %v2030_v41 }
  0x79   : > { %1890 = vmatprep.mubr.msk.bf16.mxu0 %vm2118_vm4, %v2117_v28 }
  0x80   : > { %1891 = vmatmul.mubr.msk.bf16.vlgmr.msra.gmra.mrb[16].mxu0 %vm663_vm3, %v2031_v42 }
 0x133   : > { %v1872_v46 = vpop.f32.mrb[0].mxu0 }
 0x134   : > { %v983_v47 = vpop.f32.mrb[1].mxu0 }
 0x135   : > { %v1873_v48 = vpop.f32.mrb[2].mxu0 }
 0x136   : > { %v986_v49 = vpop.f32.mrb[3].mxu0 }
 0x13b   : > { %v1876_v50 = vpop.f32.mrb[4].mxu0 }
 0x13c   : > { %v999_v51 = vpop.f32.mrb[5].mxu0 }
 0x13d   : > { %v1877_v52 = vpop.f32.mrb[6].mxu0 }
 0x13e   : > { %v1002_v53 = vpop.f32.mrb[7].mxu0 }
 0x143   : > { %v1880_v54 = vpop.f32.mrb[8].mxu0 }
 0x144   : > { %v1015_v55 = vpop.f32.mrb[9].mxu0 }
 0x145   : > { %v2325_v56 = vpop.f32.mrb[10].mxu0 }
 0x146   : > { %v1018_v57 = vpop.f32.mrb[11].mxu0 }
 0x14b   : > { %v1884_v58 = vpop.f32.mrb[12].mxu0 }
 0x14c   : > { %v1031_v59 = vpop.f32.mrb[13].mxu0 }
 0x14d   : > { %v2327_v60 = vpop.f32.mrb[14].mxu0 }
 0x14e   : > { %v1034_v61 = vpop.f32.mrb[15].mxu0 }
 0x153   : > { %v1106_v62 = vpop.f32.mrb[16].mxu0 }
 0x154   : > { %v1892_v0 = vpop.f32.mrb[17].mxu0  ;;  %v1113_v1 = vadd.f32 %v1106_v62, %v983_v47  ;;  %v1115_v2 = vadd.f32 %v1872_v46, %v1106_v62  ;;  %v1117_v3 = vadd.f32 %v1106_v62, %v999_v51  ;;  %v1119_v4 = vadd.f32 %v1876_v50, %v1106_v62 }
 0x155   : > { %v2334_v5 = vpop.f32.mrb[18].mxu0  ;;  %v1121_v6 = vadd.f32 %v1106_v62, %v1015_v55  ;;  %v1123_v7 = vadd.f32 %v1880_v54, %v1106_v62  ;;  %v1125_v8 = vadd.f32 %v1106_v62, %v1031_v59  ;;  %v2336_v9 = vadd.f32 %v1884_v58, %v1106_v62 }
 0x156   : > { %v1893_v10 = vpop.f32.mrb[19].mxu0  ;;  %v1114_v11 = vadd.f32 %v2334_v5, %v986_v49  ;;  %v1136_v12 = vadd.f32 %v2332_v63, %v1113_v1  ;;  %v1116_v13 = vadd.f32 %v1873_v48, %v2334_v5  ;;  %v1138_v14 = vadd.f32 %v2332_v63, %v1115_v2 }
 0x157   : > { %v1118_v15 = vadd.f32 %v2334_v5, %v1002_v53  ;;  %v1140_v16 = vadd.f32 %v2332_v63, %v1117_v3  ;;  %v1120_v17 = vadd.f32 %v1877_v52, %v2334_v5  ;;  %v1142_v18 = vadd.f32 %v2332_v63, %v1119_v4 }
 0x158   : > { %v1137_v19 = vadd.f32 %v2332_v63, %v1114_v11  ;;  %vm1152_vm5 = vcmp.ge.f32.partialorder %v1136_v12, 0.0  ;;  %v1168_v20 = vmul.f32 0.1, %v1136_v12  ;;  %v1139_v21 = vadd.f32 %v2332_v63, %v1116_v13 }
 0x159   : > { %vm1154_vm6 = vcmp.ge.f32.partialorder %v1138_v14, 0.0  ;;  %v1170_v22 = vmul.f32 0.1, %v1138_v14  ;;  %v1141_v23 = vadd.f32 %v2332_v63, %v1118_v15  ;;  %vm1156_vm7 = vcmp.ge.f32.partialorder %v1140_v16, 0.0 }
 0x15a   : > { %vm1153_vm8 = vcmp.ge.f32.partialorder %v1137_v19, 0.0  ;;  %v1169_v24 = vmul.f32 0.1, %v1137_v19  ;;  %v1184_v25 = vsel %vm1152_vm5, %v1136_v12, %v1168_v20  ;;  %vm1155_vm9 = vcmp.ge.f32.partialorder %v1139_v21, 0.0 }
 0x15b   : > { %v1171_v26 = vmul.f32 0.1, %v1139_v21  ;;  %v1186_v27 = vsel %vm1154_vm6, %v1138_v14, %v1170_v22  ;;  %vm1157_vm10 = vcmp.ge.f32.partialorder %v1141_v23, 0.0  ;;  %v1172_v28 = vmul.f32 0.1, %v1140_v16 }
 0x15c   : > { %v1185_v29 = vsel %vm1153_vm8, %v1137_v19, %v1169_v24  ;;  %v1173_v30 = vmul.f32 0.1, %v1141_v23  ;;  %v1143_v31 = vadd.f32 %v2332_v63, %v1120_v17  ;;  %vm1158_vm11 = vcmp.ge.f32.partialorder %v1142_v18, 0.0 }
 0x15d   : > { %v1200_v32 = vpack.c.bf16 %v1185_v29, %v1184_v25  ;;  %v1187_v33 = vsel %vm1155_vm9, %v1139_v21, %v1171_v26  ;;  %v1188_v34 = vsel %vm1156_vm7, %v1140_v16, %v1172_v28  ;;  %v1174_v35 = vmul.f32 0.1, %v1142_v18 }
 0x15e   : > { %v1201_v36 = vpack.c.bf16 %v1187_v33, %v1186_v27  ;;  %v1189_v37 = vsel %vm1157_vm10, %v1141_v23, %v1173_v30  ;;  %vm1159_vm12 = vcmp.ge.f32.partialorder %v1143_v31, 0.0  ;;  %v1175_v38 = vmul.f32 0.1, %v1143_v31 }
 0x15f   : > { %1898 = vmatprep.mubr.msk.bf16.mxu1 %vm663_vm3, %v1200_v32  ;;  %v1202_v40 = vpack.c.bf16 %v1189_v37, %v1188_v34  ;;  %v1190_v41 = vsel %vm1158_vm11, %v1142_v18, %v1174_v35  ;;  %v1122_v42 = vadd.f32 %v2334_v5, %v1018_v57  ;;  %v1144_v43 = vadd.f32 %v2332_v63, %v1121_v6 }
 0x160   : > { %1899 = vmatmul.mubr.msk.bf16.vlgmr.msra.gmra.mrb[0].mxu1 %vm663_vm3, %v1201_v36  ;;  %v1191_v44 = vsel %vm1159_vm12, %v1143_v31, %v1175_v38  ;;  %v1124_v46 = vadd.f32 %v2325_v56, %v2334_v5  ;;  %v1146_v47 = vadd.f32 %v2332_v63, %v1123_v7  ;;  %v1126_v48 = vadd.f32 %v2334_v5, %v1034_v61 }
 0x161   : > { %1902 = vmatprep.mubr.msk.bf16.mxu1 %vm663_vm3, %v1202_v40  ;;  %v1203_v49 = vpack.c.bf16 %v1191_v44, %v1190_v41  ;;  %v1145_v50 = vadd.f32 %v2332_v63, %v1122_v42  ;;  %vm1160_vm13 = vcmp.ge.f32.partialorder %v1144_v43, 0.0  ;;  %v1176_v51 = vmul.f32 0.1, %v1144_v43  ;;  %1915 = vmatpush3.bf16.msra.mxu1 %v2322_v45 }
 0x162   : > { %v1147_v52 = vadd.f32 %v2332_v63, %v1124_v46  ;;  %vm1162_vm14 = vcmp.ge.f32.partialorder %v1146_v47, 0.0  ;;  %v1178_v53 = vmul.f32 0.1, %v1146_v47  ;;  %v1148_v54 = vadd.f32 %v2332_v63, %v1125_v8  ;;  %1916 = vmatprep.subr.bf16.mxu1 %v2035_v39 }
 0x163   : > { %vm1161_vm15 = vcmp.ge.f32.partialorder %v1145_v50, 0.0  ;;  %v1177_v55 = vmul.f32 0.1, %v1145_v50  ;;  %v1192_v56 = vsel %vm1160_vm13, %v1144_v43, %v1176_v51  ;;  %v1149_v57 = vadd.f32 %v2332_v63, %v1126_v48 }
 0x164   : > { %vm1163_vm0 = vcmp.ge.f32.partialorder %v1147_v52, 0.0  ;;  %v1179_v58 = vmul.f32 0.1, %v1147_v52  ;;  %v1194_v59 = vsel %vm1162_vm14, %v1146_v47, %v1178_v53  ;;  %vm1164_vm1 = vcmp.ge.f32.partialorder %v1148_v54, 0.0 }
 0x165   : > { %v1193_v61 = vsel %vm1161_vm15, %v1145_v50, %v1177_v55  ;;  %vm1165_vm2 = vcmp.ge.f32.partialorder %v1149_v57, 0.0  ;;  %v1180_v62 = vmul.f32 0.1, %v1148_v54  ;;  %v1181_v45 = vmul.f32 0.1, %v1149_v57  ;;  %1917 = vmatpush3.bf16.msra.mxu1 %v2035_v39 }
 0x166   : > { %v1204_v0 = vpack.c.bf16 %v1193_v61, %v1192_v56  ;;  %v1195_v1 = vsel %vm1163_vm0, %v1147_v52, %v1179_v58  ;;  %v1128_v2 = vadd.f32 %v2327_v60, %v2334_v5  ;;  %v1150_v3 = vadd.f32 %v2332_v63, %v2336_v9  ;;  %v2380_v5 = vld [vmem:[%s2495_s8] ss:$0 sm:$0xff] }
 0x167   : > { %v1205_v4 = vpack.c.bf16 %v1195_v1, %v1194_v59  ;;  %v1196_v6 = vsel %vm1164_vm1, %v1148_v54, %v1180_v62  ;;  %v1197_v7 = vsel %vm1165_vm2, %v1149_v57, %v1181_v45 }
 0x168   : > { %1903 = vmatmul.mubr.msk.bf16.gmra.mrb[4].mxu1 %vm663_vm3, %v1203_v49  ;;  %v1206_v8 = vpack.c.bf16 %v1197_v7, %v1196_v6  ;;  %v1151_v10 = vadd.f32 %v2332_v63, %v1128_v2  ;;  %v1182_v11 = vmul.f32 0.1, %v1150_v3  ;;  %vm1166_vm4 = vcmp.ge.f32.partialorder %v1150_v3, 0.0 }
 0x169   : > { %1906 = vmatprep.mubr.msk.bf16.mxu1 %vm663_vm3, %v1204_v0 }
 0x16a   : > { %vm1167_vm5 = vcmp.ge.f32.partialorder %v1151_v10, 0.0  ;;  %v1183_v12 = vmul.f32 0.1, %v1151_v10  ;;  %v1198_v13 = vsel %vm1166_vm4, %v1150_v3, %v1182_v11 }
 0x16c   : > { %v1199_v14 = vsel %vm1167_vm5, %v1151_v10, %v1183_v12 }
 0x16d   : > { %v1207_v60 = vpack.c.bf16 %v1199_v14, %v1198_v13 }
 0x170   : > { %1907 = vmatmul.mubr.msk.bf16.gmra.mrb[8].mxu1 %vm663_vm3, %v1205_v4 }
 0x171   : > { %1910 = vmatprep.mubr.msk.bf16.mxu1 %vm663_vm3, %v1206_v8 }
 0x178   : > { %1911 = vmatmul.mubr.msk.bf16.gmra.mrb[12].mxu1 %vm663_vm3, %v1207_v60 }
 0x233   : > { %v1900_v63 = vpop.f32.mrb[0].mxu1 }
 0x234   : > { %v1298_v9 = vadd.f32 %v1900_v63, %v2380_v5  ;;  %v1289_v15 = vpop.f32.mrb[1].mxu1 }
 0x235   : > { %v1290_v16 = vadd.f32 %v2380_v5, %v1289_v15  ;;  %v1901_v17 = vpop.f32.mrb[2].mxu1 }
 0x236   : > { %v1370_v18 = vmul.f32 0.1, %v1298_v9  ;;  %v1301_v19 = vadd.f32 %v1901_v17, %v2380_v5  ;;  %v1292_v20 = vpop.f32.mrb[3].mxu1  ;;  %vm1354_vm6 = vcmp.ge.f32.partialorder %v1298_v9, 0.0 }
 0x237   : > { %v1368_v21 = vmul.f32 0.1, %v1290_v16  ;;  %v1293_v22 = vadd.f32 %v2380_v5, %v1292_v20  ;;  %vm1352_vm7 = vcmp.ge.f32.partialorder %v1290_v16, 0.0 }
 0x238   : > { %vm1355_vm8 = vcmp.ge.f32.partialorder %v1301_v19, 0.0  ;;  %v1371_v23 = vmul.f32 0.1, %v1301_v19  ;;  %v1386_v25 = vsel %vm1354_vm6, %v1298_v9, %v1370_v18 }
 0x239   : > { %vm1353_vm9 = vcmp.ge.f32.partialorder %v1293_v22, 0.0  ;;  %v1369_v24 = vmul.f32 0.1, %v1293_v22  ;;  %v1384_v27 = vsel %vm1352_vm7, %v1290_v16, %v1368_v21 }
 0x23a   : > { %v1387_v26 = vsel %vm1355_vm8, %v1301_v19, %v1371_v23 }
 0x23b   : > { %v1401_v28 = vpack.c.bf16 %v1387_v26, %v1386_v25  ;;  %v1385_v29 = vsel %vm1353_vm9, %v1293_v22, %v1369_v24  ;;  %v1904_v30 = vpop.f32.mrb[4].mxu1  ;;  %v2119_v22 = vmov -inf   ;;  %v1787_v26 = vld [vmem:[%s2497_s10] ss:$0 sm:$0xff] }
 0x23c   : > { %v1400_v31 = vpack.c.bf16 %v1385_v29, %v1384_v27  ;;  %v1314_v32 = vadd.f32 %v1904_v30, %v2380_v5  ;;  %v1305_v33 = vpop.f32.mrb[5].mxu1  ;;  %664 = vst.msk [vmem:[#allocation2] sm:$0xff] %vm663_vm3, %v2119_v22  ;;  %665 = vst.msk [vmem:[#allocation2 + $0x8] sm:$0xff] %vm663_vm3, %v2119_v22 }
 0x23d   : > { %v1306_v34 = vadd.f32 %v2380_v5, %v1305_v33  ;;  %v1905_v35 = vpop.f32.mrb[6].mxu1 }
 0x23e   : > { %v1374_v36 = vmul.f32 0.1, %v1314_v32  ;;  %v1317_v37 = vadd.f32 %v1905_v35, %v2380_v5  ;;  %v1308_v38 = vpop.f32.mrb[7].mxu1  ;;  %1918 = vmatprep.mubr.msk.bf16.mxu1 %vm663_vm3, %v1400_v31  ;;  %vm1358_vm10 = vcmp.ge.f32.partialorder %v1314_v32, 0.0 }
 0x23f   : > { %v1372_v39 = vmul.f32 0.1, %v1306_v34  ;;  %v1309_v40 = vadd.f32 %v2380_v5, %v1308_v38  ;;  %1919 = vmatmul.mubr.msk.bf16.vlgmr.msra.gmra.mrb[16].mxu1 %vm663_vm3, %v1401_v28  ;;  %vm1356_vm11 = vcmp.ge.f32.partialorder %v1306_v34, 0.0 }
 0x240   : > { %vm1359_vm12 = vcmp.ge.f32.partialorder %v1317_v37, 0.0  ;;  %v1375_v41 = vmul.f32 0.1, %v1317_v37  ;;  %v1390_v43 = vsel %vm1358_vm10, %v1314_v32, %v1374_v36 }
 0x241   : > { %vm1357_vm13 = vcmp.ge.f32.partialorder %v1309_v40, 0.0  ;;  %v1373_v42 = vmul.f32 0.1, %v1309_v40  ;;  %v1388_v46 = vsel %vm1356_vm11, %v1306_v34, %v1372_v39 }
 0x242   : > { %v1391_v44 = vsel %vm1359_vm12, %v1317_v37, %v1375_v41 }
 0x243   : > { %v1403_v47 = vpack.c.bf16 %v1391_v44, %v1390_v43  ;;  %v1389_v48 = vsel %vm1357_vm13, %v1309_v40, %v1373_v42  ;;  %v1908_v49 = vpop.f32.mrb[8].mxu1  ;;  %v1553_v22 = vld [vmem:[#allocation2 + $0x8] sm:$0xff] }
 0x244   : > { %v1402_v50 = vpack.c.bf16 %v1389_v48, %v1388_v46  ;;  %v1330_v51 = vadd.f32 %v1908_v49, %v2380_v5  ;;  %v1321_v52 = vpop.f32.mrb[9].mxu1 }
 0x245   : > { %v1322_v53 = vadd.f32 %v2380_v5, %v1321_v52  ;;  %v1909_v54 = vpop.f32.mrb[10].mxu1 }
 0x246   : > { %v1378_v55 = vmul.f32 0.1, %v1330_v51  ;;  %v1333_v56 = vadd.f32 %v1909_v54, %v2380_v5  ;;  %v1324_v57 = vpop.f32.mrb[11].mxu1  ;;  %1922 = vmatprep.mubr.msk.bf16.mxu1 %vm663_vm3, %v1402_v50  ;;  %vm1362_vm14 = vcmp.ge.f32.partialorder %v1330_v51, 0.0 }
 0x247   : > { %v1376_v58 = vmul.f32 0.1, %v1322_v53  ;;  %v1325_v59 = vadd.f32 %v2380_v5, %v1324_v57  ;;  %1923 = vmatmul.mubr.msk.bf16.gmra.mrb[20].mxu1 %vm663_vm3, %v1403_v47  ;;  %vm1360_vm15 = vcmp.ge.f32.partialorder %v1322_v53, 0.0 }
 0x248   : > { %vm1363_vm0 = vcmp.ge.f32.partialorder %v1333_v56, 0.0  ;;  %v1379_v61 = vmul.f32 0.1, %v1333_v56  ;;  %v1394_v45 = vsel %vm1362_vm14, %v1330_v51, %v1378_v55 }
 0x249   : > { %vm1361_vm1 = vcmp.ge.f32.partialorder %v1325_v59, 0.0  ;;  %v1377_v62 = vmul.f32 0.1, %v1325_v59  ;;  %v1392_v1 = vsel %vm1360_vm15, %v1322_v53, %v1376_v58 }
 0x24a   : > { %v1395_v0 = vsel %vm1363_vm0, %v1333_v56, %v1379_v61 }
 0x24b   : > { %v1405_v2 = vpack.c.bf16 %v1395_v0, %v1394_v45  ;;  %v1393_v3 = vsel %vm1361_vm1, %v1325_v59, %v1377_v62  ;;  %v1912_v4 = vpop.f32.mrb[12].mxu1 }
 0x24c   : > { %v1404_v6 = vpack.c.bf16 %v1393_v3, %v1392_v1  ;;  %v1346_v7 = vadd.f32 %v1912_v4, %v2380_v5  ;;  %v1337_v8 = vpop.f32.mrb[13].mxu1 }
 0x24d   : > { %v1338_v10 = vadd.f32 %v2380_v5, %v1337_v8  ;;  %v1913_v11 = vpop.f32.mrb[14].mxu1 }
 0x24e   : > { %v1382_v12 = vmul.f32 0.1, %v1346_v7  ;;  %v1349_v13 = vadd.f32 %v1913_v11, %v2380_v5  ;;  %v1340_v14 = vpop.f32.mrb[15].mxu1  ;;  %1926 = vmatprep.mubr.msk.bf16.mxu1 %vm663_vm3, %v1404_v6  ;;  %vm1366_vm2 = vcmp.ge.f32.partialorder %v1346_v7, 0.0 }
 0x24f   : > { %v1380_v60 = vmul.f32 0.1, %v1338_v10  ;;  %v1341_v63 = vadd.f32 %v2380_v5, %v1340_v14  ;;  %1927 = vmatmul.mubr.msk.bf16.gmra.mrb[24].mxu1 %vm663_vm3, %v1405_v2  ;;  %vm1364_vm4 = vcmp.ge.f32.partialorder %v1338_v10, 0.0 }
 0x250   : > { %vm1367_vm5 = vcmp.ge.f32.partialorder %v1349_v13, 0.0  ;;  %v1383_v9 = vmul.f32 0.1, %v1349_v13  ;;  %v1398_v16 = vsel %vm1366_vm2, %v1346_v7, %v1382_v12 }
 0x251   : > { %vm1365_vm6 = vcmp.ge.f32.partialorder %v1341_v63, 0.0  ;;  %v1381_v15 = vmul.f32 0.1, %v1341_v63  ;;  %v1396_v18 = vsel %vm1364_vm4, %v1338_v10, %v1380_v60 }
 0x252   : > { %v1399_v17 = vsel %vm1367_vm5, %v1349_v13, %v1383_v9 }
 0x253   : > { %v1407_v19 = vpack.c.bf16 %v1399_v17, %v1398_v16  ;;  %v1397_v20 = vsel %vm1365_vm6, %v1341_v63, %v1381_v15  ;;  %v1552_v17 = vld [vmem:[#allocation2] sm:$0xff] }
 0x254   : > { %v1406_v21 = vpack.c.bf16 %v1397_v20, %v1396_v18 }
 0x256   : > { %1930 = vmatprep.mubr.msk.bf16.mxu1 %vm663_vm3, %v1406_v21 }
 0x257   : > { %1931 = vmatmul.mubr.msk.bf16.gmra.mrb[28].mxu1 %vm663_vm3, %v1407_v19 }
 0x312   : > { %v1920_v5 = vpop.f32.mrb[16].mxu1 }
 0x313   : > { %v1489_v23 = vpop.f32.mrb[17].mxu1  ;;  %v1498_v27 = vadd.f32 %v1920_v5, %v1787_v26 }
 0x314   : > { %v1921_v24 = vpop.f32.mrb[18].mxu1  ;;  %v1490_v28 = vadd.f32 %v1787_v26, %v1489_v23 }
 0x315   : > { %v1492_v25 = vpop.f32.mrb[19].mxu1  ;;  %v1501_v30 = vadd.f32 %v1921_v24, %v1787_v26  ;;  %v1555_v36 = vsel %vm663_vm3, %v1498_v27, -inf }
 0x316   : > { %v1493_v33 = vadd.f32 %v1787_v26, %v1492_v25  ;;  %v1554_v40 = vsel %vm663_vm3, %v1490_v28, -inf }
 0x317   : > { %v1570_v44 = vsel %vm663_vm3, %v1501_v30, -inf }
 0x318   : > { %v1569_v48 = vsel %vm663_vm3, %v1493_v33, -inf }
 0x31a   : > { %v1924_v29 = vpop.f32.mrb[20].mxu1 }
 0x31b   : > { %v1514_v31 = vadd.f32 %v1924_v29, %v1787_v26  ;;  %v1505_v32 = vpop.f32.mrb[21].mxu1 }
 0x31c   : > { %v1506_v34 = vadd.f32 %v1787_v26, %v1505_v32  ;;  %v1925_v35 = vpop.f32.mrb[22].mxu1 }
 0x31d   : > { %v1558_v37 = vsel %vm663_vm3, %v1514_v31, -inf  ;;  %v1517_v38 = vadd.f32 %v1925_v35, %v1787_v26  ;;  %v1508_v39 = vpop.f32.mrb[23].mxu1 }
 0x31e   : > { %v1559_v41 = vmax.f32 %v1555_v36, %v1558_v37  ;;  %v1556_v42 = vsel %vm663_vm3, %v1506_v34, -inf  ;;  %v1509_v43 = vadd.f32 %v1787_v26, %v1508_v39 }
 0x31f   : > { %v1557_v46 = vmax.f32 %v1554_v40, %v1556_v42  ;;  %v1573_v47 = vsel %vm663_vm3, %v1517_v38, -inf }
 0x320   : > { %v1574_v49 = vmax.f32 %v1570_v44, %v1573_v47  ;;  %v1571_v50 = vsel %vm663_vm3, %v1509_v43, -inf }
 0x321   : > { %v1572_v51 = vmax.f32 %v1569_v48, %v1571_v50 }
 0x322   : > { %v1928_v52 = vpop.f32.mrb[24].mxu1 }
 0x323   : > { %v1530_v53 = vadd.f32 %v1928_v52, %v1787_v26  ;;  %v1521_v54 = vpop.f32.mrb[25].mxu1 }
 0x324   : > { %v1522_v55 = vadd.f32 %v1787_v26, %v1521_v54  ;;  %v1929_v56 = vpop.f32.mrb[26].mxu1 }
 0x325   : > { %v1562_v57 = vsel %vm663_vm3, %v1530_v53, -inf  ;;  %v1533_v58 = vadd.f32 %v1929_v56, %v1787_v26  ;;  %v1524_v59 = vpop.f32.mrb[27].mxu1 }
 0x326   : > { %v1563_v61 = vmax.f32 %v1559_v41, %v1562_v57  ;;  %v1560_v62 = vsel %vm663_vm3, %v1522_v55, -inf  ;;  %v1525_v45 = vadd.f32 %v1787_v26, %v1524_v59 }
 0x327   : > { %v1561_v0 = vmax.f32 %v1557_v46, %v1560_v62  ;;  %v1577_v1 = vsel %vm663_vm3, %v1533_v58, -inf }
 0x328   : > { %v1578_v2 = vmax.f32 %v1574_v49, %v1577_v1  ;;  %v1575_v3 = vsel %vm663_vm3, %v1525_v45, -inf }
 0x329   : > { %v1576_v4 = vmax.f32 %v1572_v51, %v1575_v3 }
 0x32a   : > { %v1932_v6 = vpop.f32.mrb[28].mxu1 }
 0x32b   : > { %v1546_v7 = vadd.f32 %v1932_v6, %v1787_v26  ;;  %v1537_v8 = vpop.f32.mrb[29].mxu1 }
 0x32c   : > { %v1538_v10 = vadd.f32 %v1787_v26, %v1537_v8  ;;  %v1933_v11 = vpop.f32.mrb[30].mxu1 }
 0x32d   : > { %v1566_v12 = vsel %vm663_vm3, %v1546_v7, -inf  ;;  %v1549_v13 = vadd.f32 %v1933_v11, %v1787_v26  ;;  %v1540_v14 = vpop.f32.mrb[31].mxu1 }
 0x32e   : > { %v1567_v60 = vmax.f32 %v1563_v61, %v1566_v12  ;;  %v1564_v63 = vsel %vm663_vm3, %v1538_v10, -inf  ;;  %v1541_v9 = vadd.f32 %v1787_v26, %v1540_v14 }
 0x32f   : > { %v1565_v15 = vmax.f32 %v1561_v0, %v1564_v63  ;;  %v1581_v16 = vsel %vm663_vm3, %v1549_v13, -inf }
 0x330   : > { %v1582_v18 = vmax.f32 %v1578_v2, %v1581_v16  ;;  %v1579_v19 = vsel %vm663_vm3, %v1541_v9, -inf }
 0x331   : > { %v1568_v20 = vmax.f32 %v1565_v15, %v1567_v60  ;;  %v1580_v21 = vmax.f32 %v1576_v4, %v1579_v19 }
 0x333   : > { %v1584_v5 = vmax.f32 %v1552_v17, %v1568_v20  ;;  %v1583_v23 = vmax.f32 %v1580_v21, %v1582_v18 }
 0x335   : > { %1586 = vst.msk [vmem:[#allocation2] sm:$0xff] %vm663_vm3, %v1584_v5  ;;  %v1585_v24 = vmax.f32 %v1553_v22, %v1583_v23 }
 0x337   : > { %1587 = vst.msk [vmem:[#allocation2 + $0x8] sm:$0xff] %vm663_vm3, %v1585_v24 }
 0x33c   : > { %v1591_v25 = vld [vmem:[#allocation2] sm:$0xff] }
 0x33d   : > { %1593 = vst.msk [vmem:[%s646_s14] sm:$0xff] %vm663_vm3, %v1591_v25 }
 0x33e   : > { %v1592_v26 = vld [vmem:[#allocation2 + $0x8] sm:$0xff] }
 0x33f   : > { %1594 = vst.msk [vmem:[%s646_s14 + $0x8] sm:$0xff] %vm663_vm3, %v1592_v26 }
 0x340   : > { %2049 = shalt.err (!%p2046_p8)
}
 0x341   : > { %s2050_s14 = scalar_lea.hbm %s2434_s13, 256  ;;  %s2054_s27 = scalar_lea.hbm %s2498_s11, 512 }
 0x342   : > { %p2051_p11 = scmp.ne.s32.totalorder %s2434_s13, %s2050_s14  ;;  %p2055_p0 = scmp.lt.u32.totalorder %s2434_s13, %s2498_s11 }
 0x343   : > { %p2056_p1 = scmp.lt.u32.totalorder %s2054_s27, %s2050_s14  ;;  %p2058_p3 = scmp.lt.u32.totalorder %s2050_s14, %s2434_s13 }
 0x344   : > { %p2052_p12 = pnand %p2051_p11, %p2226_p5 }
 0x345   : > { %p2057_p2 = por %p2056_p1, %p2055_p0 }
 0x346   : > { %p2053_p13 = pneg %p2052_p12 }
 0x347   : > { %p2059_p4 = por %p2058_p3, %p2057_p2 }
 0x349   : > { %p2060_p6 = pnand %p2059_p4, %p2053_p13 }
 0x34b   : > { %2063 = shalt.err (!%p2060_p6)
}
 0x34c   : > { %s2121_s20 = smov 128   ;;  %s2122_s16 = smov 8  }
 0x34d   : > { %s2506_s1 = scalar_lea.sflag [#allocation6], %s2264_s26 }
 0x34e   : > { %1950 = dma.vmem_to_hbm [thread:$0]  (%p2226_p5), %s2436_s23, 256, %s2434_s13, %s2506_s1, %s2121_s20, %s2121_s20, %s2122_s16  }
 0x34f PF: > { %s1624_s0 = sand.u32 1, %s2094_s17   ;;  %p1953_p7 = pnand %p1724_p10, %p2237_p9 }
 0x350   : > { %s1625_s14 = scalar_lea.sflag [#allocation6], %s1624_s0 }
 0x351   : > { %2089 = dma.done.wait (!%p1953_p7), %s1625_s14, 256  }
 0x352   : > { %2091 = vsyncadd (!%p1953_p7), %s1625_s14, 4294967040  ;;  %s24_s22 = sadd.s32 1, %s2114_s22   ;;  %s2507_s17 = smov %s2098_s18 }
 0x353   : > { %p21_p8 = scmp.ge.s32.totalorder %s24_s22, 4   ;;  %s2508_s18 = smov %s2102_s19 }
 0x354   : > { %s2509_s19 = smov %s2235_s30  ;;  %s2510_s20 = smov %s2110_s21 }
 0x355   : > { %s2511_s21 = smov %s2513_s25  ;;  %23 = sbr.rel (!%p21_p8) target bundleno = 7 (0x7), region = 205 }
 0x35c   :  { %1630 = vsyncpa [#allocation6], 1 }
 0x35d   :  { %1632 = vsyncpa [#allocation6 + $0x1], 1 }

</bundles_post_ra>
